<compile_context>
chip_gen: v5e
topology: v5e:2x2
jax: 0.10.0
libtpu: 0.0.40
codegen_flags: <defaults>
</compile_context>

<pallas_src>
import numpy as np
import jax
import jax.numpy as jnp
from jax import lax
from jax.experimental import pallas as pl
from jax.experimental.pallas import tpu as pltpu

LN_EPS = 1e-5
LANE = 128
VMEM_LIMIT = 32 * 1024 * 1024   # fits v7x (64 MiB/TC); plenty of headroom on v5e/v6e


def _round_up(n, m):
    return ((n + m - 1) // m) * m


def _pad_to(a, shape, value=0):
    pads = [(0, s - d) for d, s in zip(a.shape, shape)]
    return jnp.pad(a, pads, constant_values=value)


# ----------------------------------------------------------------------------------
# In-kernel building blocks
# ----------------------------------------------------------------------------------
def _taps_bf16(h):
    """(T, C) f32 -> (T, 3C) bf16 = [h[t-1], h[t], h[t+1]] with zero conv padding at the
    edges.  Built with static slices (no pltpu.roll, no negative shifts) and cast to
    bf16 per-tap so the stacked buffer is bf16 (MXU-native) directly."""
    T, C = h.shape
    z = jnp.zeros((1, C), h.dtype)
    prev = jnp.concatenate([z, h[:T - 1, :]], axis=0)
    nxt = jnp.concatenate([h[1:, :], z], axis=0)
    return jnp.concatenate([prev.astype(jnp.bfloat16),
                            h.astype(jnp.bfloat16),
                            nxt.astype(jnp.bfloat16)], axis=-1)


def _layernorm_padded(y, gamma, beta, f_real):
    """LayerNorm over the channel dim.  Padded channels of y / gamma / beta are exactly
    zero, so sums over the padded width equal sums over the real width F."""
    inv_f = 1.0 / float(f_real)
    mu = jnp.sum(y, axis=-1, keepdims=True) * inv_f
    var = jnp.sum(y * y, axis=-1, keepdims=True) * inv_f - mu * mu
    return (y - mu) * lax.rsqrt(var + LN_EPS) * gamma + beta


def _vp_from_taps(taps1, w1, b1, g1, be1, w2, b2, g2, be2, wl, lb, t_real, f_real):
    """conv1d(k3,p1) -> LN -> ReLU -> conv1d(k3,p1) -> LN -> ReLU -> Linear(F->1).
    taps1: (Tp, 3*Cp) bf16 precomputed (shared across predictors that read the same x).
    Returns a lane-dense (1, Tp) prediction row."""
    Tp = taps1.shape[0]
    row = lax.broadcasted_iota(jnp.int32, (Tp, 1), 0)
    frame_ok = row < t_real                                 # frames that exist in torch

    # conv1: single stacked-tap matmul (bf16 operands, f32 accumulation on the MXU)
    y = jnp.dot(taps1, w1, preferred_element_type=jnp.float32) + b1
    h = jnp.maximum(_layernorm_padded(y, g1, be1, f_real), 0.0)
    h = jnp.where(frame_ok, h, 0.0)      # frames >= t_real are conv zero-padding in torch
    # dropout: eval-mode identity
    y = jnp.dot(_taps_bf16(h), w2, preferred_element_type=jnp.float32) + b2
    h = jnp.maximum(_layernorm_padded(y, g2, be2, f_real), 0.0)
    # Linear(F -> 1).squeeze(-1), emitted lane-dense:  (1,F) x (Tp,F)^T -> (1,Tp)
    pred = lax.dot_general(wl, h, (((1,), (1,)), ((), ())),
                           preferred_element_type=jnp.float32)
    return pred + lb


def _bucket_embedding(target_row, bins_col, table, mask_row):
    """torch.bucketize(right=False) + nn.Embedding + mask, all in lane-dense layout.
    target_row/mask_row: (1, Tp); bins_col: (n_bins-1, 1); table: (n_bins, Hp).
    bucket index = #(boundaries < target)  == torch.bucketize(right=False), ties included.
    Returns (Tp, Hp)."""
    nb = table.shape[0]
    cnt = jnp.sum((target_row > bins_col).astype(jnp.int32), axis=0, keepdims=True)  # (1,Tp)
    b_iota = lax.broadcasted_iota(jnp.int32, (nb, 1), 0)
    oh_t = jnp.where(cnt == b_iota, 1.0, 0.0) * mask_row                              # (nb,Tp)
    # one-hot^T @ table  ->  exact embedding gather on the MXU
    return lax.dot_general(oh_t, table, (((0,), (0,)), ((), ())),
                           preferred_element_type=jnp.float32)                        # (Tp,Hp)


# ----------------------------------------------------------------------------------
# Kernel bodies
# ----------------------------------------------------------------------------------
def _make_duration_kernel(t_real, f_real):
    def kernel(x_ref, w1, b1, g1, be1, w2, b2, g2, be2, wl, lb_ref, o_ref):
        taps1 = _taps_bf16(x_ref[0])
        pred = _vp_from_taps(taps1,
                             w1[...], b1[...], g1[...], be1[...],
                             w2[...], b2[...], g2[...], be2[...],
                             wl[...], lb_ref[0], t_real, f_real)
        o_ref[...] = pred[None]
    return kernel


def _make_fused_lr_pitch_energy_kernel(t_mel, f_real):
    """Length-regulator (alignment @ x) + pitch/energy predictors + bucketize +
    embedding lookup + mask + residual add, fused in one pass over VMEM."""
    def kernel(x_ref, csum_ref, dur_ref, pt_ref, et_ref, mk_ref,
               pbins_ref, ebins_ref, ptab_ref, etab_ref,
               pw1, pb1, pg1, pbe1, pw2, pb2, pg2, pbe2, pwl,
               ew1, eb1, eg1, ebe1, ew2, eb2, eg2, ebe2, ewl,
               lb_ref,
               out_ref, pp_ref, ep_ref):
        x = x_ref[0]                                    # (Tsp_src, Hp) f32
        csum = csum_ref[0]                              # (1, Tsp_src) f32 (inclusive cumsum)
        dur = dur_ref[0]                                # (1, Tsp_src) f32
        Tp = out_ref.shape[1]

        # ---- LengthRegulator.LR: build one-hot alignment rows and gather via the MXU.
        # row t selects token s with csum[s]-dur[s] <= t < csum[s]; padded tokens have
        # dur=0 so they never match; frames >= total duration get an all-zero row.
        frames = lax.broadcasted_iota(jnp.float32, (Tp, 1), 0)
        align = jnp.logical_and(frames >= (csum - dur), frames < csum).astype(jnp.float32)
        x_lr = jnp.dot(align, x, preferred_element_type=jnp.float32)     # (Tp, Hp), exact

        # ---- shared conv1 taps for both predictors (dedup: built once from x_lr)
        taps1 = _taps_bf16(x_lr)

        pp = _vp_from_taps(taps1, pw1[...], pb1[...], pg1[...], pbe1[...],
                           pw2[...], pb2[...], pg2[...], pbe2[...],
                           pwl[...], lb_ref[0], t_mel, f_real)
        ep = _vp_from_taps(taps1, ew1[...], eb1[...], eg1[...], ebe1[...],
                           ew2[...], eb2[...], eg2[...], ebe2[...],
                           ewl[...], lb_ref[1], t_mel, f_real)
        pp_ref[...] = pp[None]
        ep_ref[...] = ep[None]

        mask_row = mk_ref[0]                            # (1, Tp) lane-dense
        pemb = _bucket_embedding(pt_ref[0], pbins_ref[...], ptab_ref[...], mask_row)
        eemb = _bucket_embedding(et_ref[0], ebins_ref[...], etab_ref[...], mask_row)
        out_ref[...] = (x_lr + pemb + eemb)[None]
    return kernel


# ----------------------------------------------------------------------------------
# Wrappers (weight prep + pallas_call)
# ----------------------------------------------------------------------------------
def _prep_vp_weights(p, cp_in, fp):
    """Zero-pad channels to lane multiples and stack the 3 conv taps along the
    contraction dim; conv weights are cast to bf16 once here (MXU-native)."""
    def stack(w, cp):  # w: (F, C, 3) -> (3*cp, fp) bf16, tap order [prev, cur, next]
        return jnp.concatenate(
            [_pad_to(w[:, :, k].T.astype(jnp.float32), (cp, fp)) for k in range(3)],
            axis=0).astype(jnp.bfloat16)

    def rowvec(v):
        return _pad_to(v.reshape(1, -1).astype(jnp.float32), (1, fp))

    return dict(
        w1=stack(p['c1_w'], cp_in), b1=rowvec(p['c1_b']),
        g1=rowvec(p['ln1_g']), be1=rowvec(p['ln1_b']),
        w2=stack(p['c2_w'], fp), b2=rowvec(p['c2_b']),
        g2=rowvec(p['ln2_g']), be2=rowvec(p['ln2_b']),
        wl=_pad_to(p['lin_w'].astype(jnp.float32), (1, fp)),
        lb=p['lin_b'].astype(jnp.float32),            # (1,) scalar -> SMEM
    )


def _weight_list(w):
    return [w['w1'], w['b1'], w['g1'], w['be1'],
            w['w2'], w['b2'], w['g2'], w['be2'], w['wl']]


def _full_spec(a):
    # TODO(synk): grid-invariant weights could be single-buffered (pipeline_mode) to
    # shave VMEM; default double-buffering kept for portability.
    return pl.BlockSpec(a.shape, lambda *_, n=a.ndim: (0,) * n)


def run_duration_predictor(p, x, f_real):
    B, T, H = x.shape
    Hp, Fp = _round_up(H, LANE), _round_up(f_real, LANE)
    Tsp = _round_up(T, 8)            # conv path only needs sublane (8) alignment
    xp = _pad_to(x, (B, Tsp, Hp))
    w = _prep_vp_weights(p, Hp, Fp)
    weights = _weight_list(w)

    out = pl.pallas_call(
        _make_duration_kernel(T, f_real),
        grid=(B,),
        out_shape=jax.ShapeDtypeStruct((B, 1, Tsp), jnp.float32),
        in_specs=[pl.BlockSpec((1, Tsp, Hp), lambda b: (b, 0, 0))]
                 + [_full_spec(a) for a in weights]
                 + [pl.BlockSpec(memory_space=pltpu.MemorySpace.SMEM)],
        out_specs=pl.BlockSpec((1, 1, Tsp), lambda b: (b, 0, 0)),
        compiler_params=pltpu.CompilerParams(
            dimension_semantics=("parallel",), vmem_limit_bytes=VMEM_LIMIT),
    )(xp, *weights, w['lb'])
    return out[:, 0, :T]


def run_lr_pitch_energy_fuse(params, x_pad, csum_pad, dur_pad,
                             pt_pad, et_pad, mask_pad, t_mel, f_real):
    B, Tsp, Hp = x_pad.shape
    Tp = pt_pad.shape[-1]
    Fp = _round_up(f_real, LANE)
    n_bins = params['pitch_embedding'].shape[0]

    wp = _prep_vp_weights(params['pitch_predictor'], Hp, Fp)
    we = _prep_vp_weights(params['energy_predictor'], Hp, Fp)
    pw, ew = _weight_list(wp), _weight_list(we)
    lb = jnp.concatenate([wp['lb'], we['lb']])                       # (2,) SMEM scalars

    pbins = params['pitch_bins'].astype(jnp.float32).reshape(-1, 1)  # (n_bins-1, 1)
    ebins = params['energy_bins'].astype(jnp.float32).reshape(-1, 1)
    ptab = _pad_to(params['pitch_embedding'].astype(jnp.float32), (n_bins, Hp))
    etab = _pad_to(params['energy_embedding'].astype(jnp.float32), (n_bins, Hp))

    def bspec(shape):
        return pl.BlockSpec(shape, lambda b: (b, 0, 0))

    in_specs = ([bspec((1, Tsp, Hp)), bspec((1, 1, Tsp)), bspec((1, 1, Tsp)),
                 bspec((1, 1, Tp)), bspec((1, 1, Tp)), bspec((1, 1, Tp)),
                 _full_spec(pbins), _full_spec(ebins), _full_spec(ptab), _full_spec(etab)]
                + [_full_spec(a) for a in pw] + [_full_spec(a) for a in ew]
                + [pl.BlockSpec(memory_space=pltpu.MemorySpace.SMEM)])

    out_shapes = (jax.ShapeDtypeStruct((B, Tp, Hp), jnp.float32),
                  jax.ShapeDtypeStruct((B, 1, Tp), jnp.float32),
                  jax.ShapeDtypeStruct((B, 1, Tp), jnp.float32))
    out_specs = (bspec((1, Tp, Hp)), bspec((1, 1, Tp)), bspec((1, 1, Tp)))

    return pl.pallas_call(
        _make_fused_lr_pitch_energy_kernel(t_mel, f_real),
        grid=(B,),
        out_shape=out_shapes,
        in_specs=in_specs,
        out_specs=out_specs,
        compiler_params=pltpu.CompilerParams(
            dimension_semantics=("parallel",), vmem_limit_bytes=VMEM_LIMIT),
    )(x_pad, csum_pad, dur_pad, pt_pad, et_pad, mask_pad,
      pbins, ebins, ptab, etab, *pw, *ew, lb)


# ----------------------------------------------------------------------------------
# Parameter init + full forward (glue)
# ----------------------------------------------------------------------------------
def init_vp_params(key, in_size, filt):
    ks = jax.random.split(key, 6)
    return dict(
        c1_w=0.1 * jax.random.normal(ks[0], (filt, in_size, 3), jnp.float32),
        c1_b=0.1 * jax.random.normal(ks[1], (filt,), jnp.float32),
        ln1_g=jnp.ones((filt,), jnp.float32), ln1_b=jnp.zeros((filt,), jnp.float32),
        c2_w=0.1 * jax.random.normal(ks[2], (filt, filt, 3), jnp.float32),
        c2_b=0.1 * jax.random.normal(ks[3], (filt,), jnp.float32),
        ln2_g=jnp.ones((filt,), jnp.float32), ln2_b=jnp.zeros((filt,), jnp.float32),
        lin_w=0.1 * jax.random.normal(ks[4], (1, filt), jnp.float32),
        lin_b=0.1 * jax.random.normal(ks[5], (1,), jnp.float32),
    )


def init_params(key, cfg, stats):
    ks = jax.random.split(key, 5)
    n_bins, H = cfg['n_bins'], cfg['hidden_size']
    F_ = cfg['variance_predictor_filter_size']
    return dict(
        duration_predictor=init_vp_params(ks[0], H, F_),
        pitch_predictor=init_vp_params(ks[1], H, F_),
        energy_predictor=init_vp_params(ks[2], H, F_),
        pitch_bins=jnp.linspace(stats['pitch_min'], stats['pitch_max'], n_bins - 1),
        energy_bins=jnp.linspace(stats['energy_min'], stats['energy_max'], n_bins - 1),
        pitch_embedding=0.1 * jax.random.normal(ks[3], (n_bins, H), jnp.float32),
        energy_embedding=0.1 * jax.random.normal(ks[4], (n_bins, H), jnp.float32),
    )


def variance_adaptor_forward(params, cfg, x, src_pos, mel_pos,
                             pitch_target, energy_target, duration_target):
    H = cfg['hidden_size']
    F_ = cfg['variance_predictor_filter_size']
    pad_id = cfg['pad_id']
    d_control = cfg.get('duration_control', 1.0)
    B, T_src, _ = x.shape
    Hp = _round_up(H, LANE)

    # ---- LengthRegulator: duration predictor ----
    log_duration_prediction = run_duration_predictor(params['duration_predictor'], x, F_)
    duration_rounded = jnp.round(
        jnp.maximum((jnp.exp(log_duration_prediction) - 1.0) * d_control, 0.0)
    ).astype(jnp.int32)

    # expand_max_len host sync mirrors torch `.item()` (faithful to the reference);
    # mel time is bucketed to a power of two to limit recompiles across utterances.
    T_mel = int(jnp.max(jnp.sum(duration_target, axis=-1)))
    Tp_mel = max(8, int(pl.next_power_of_2(T_mel)))
    # TODO(synk): mel_max_length F.pad branch and the predicted-duration (inference)
    # LR path (use_target_duration=False) are not exercised here.

    # ---- inputs for the fused LR + pitch/energy kernel (all lane-dense) ----
    Tsp = _round_up(T_src, 8)
    x_pad = _pad_to(x, (B, Tsp, Hp))
    csum = jnp.cumsum(duration_target.astype(jnp.float32), axis=-1)        # (B, T_src)
    dur = duration_target.astype(jnp.float32)
    csum_pad = _pad_to(csum[:, None, :], (B, 1, Tsp))
    dur_pad = _pad_to(dur[:, None, :], (B, 1, Tsp))

    mel_pos_pad = _pad_to(mel_pos, (B, Tp_mel), value=pad_id)
    mask_pad = (mel_pos_pad != pad_id).astype(jnp.float32)[:, None, :]     # (B,1,Tp_mel)
    pt_pad = _pad_to(pitch_target[:, None, :], (B, 1, Tp_mel))
    et_pad = _pad_to(energy_target[:, None, :], (B, 1, Tp_mel))

    # ---- fused: alignment@x + pitch/energy predictors + bucketize + embed + residual ----
    out_pad, pp_pad, ep_pad = run_lr_pitch_energy_fuse(
        params, x_pad, csum_pad, dur_pad, pt_pad, et_pad, mask_pad, T_mel, F_)

    out = out_pad[:, :T_mel, :H]
    pitch_prediction = pp_pad[:, 0, :T_mel]
    energy_prediction = ep_pad[:, 0, :T_mel]
    return (out, log_duration_prediction, duration_rounded,
            pitch_prediction, energy_prediction, mel_pos)


# ----------------------------------------------------------------------------------
if __name__ == "__main__":
    cfg = dict(hidden_size=32, variance_predictor_filter_size=32,
               variance_predictor_dropout=0.5, pad_id=0, n_bins=16,
               duration_control=1.0, pitch_control=1.0, energy_control=1.0,
               use_target_pitch_and_energy=True)
    stats = dict(pitch_min=-2.0, pitch_max=8.0, energy_min=0.0, energy_max=5.0)

    B, T_src, H = 2, 8, cfg['hidden_size']
    key = jax.random.PRNGKey(0)
    kp, kx, kpt, ket = jax.random.split(key, 4)

    params = init_params(kp, cfg, stats)

    x = jax.random.normal(kx, (B, T_src, H), jnp.float32)
    src_pos = jnp.tile(jnp.arange(1, T_src + 1, dtype=jnp.int32)[None], (B, 1))

    # deterministic durations -> T_mel = 14 for both sequences
    duration_target = jnp.array([[1, 2, 1, 3, 2, 1, 2, 2],
                                 [2, 1, 3, 1, 2, 2, 1, 2]], dtype=jnp.int32)
    lengths = np.asarray(duration_target.sum(-1))
    T_mel = int(lengths.max())

    mel_pos_np = np.full((B, T_mel), cfg['pad_id'], dtype=np.int32)
    for i, L in enumerate(lengths):
        mel_pos_np[i, :L] = np.arange(1, L + 1, dtype=np.int32)
    mel_pos = jnp.asarray(mel_pos_np)

    pitch_target = jax.random.uniform(kpt, (B, T_mel), jnp.float32, minval=-2.0, maxval=8.0)
    energy_target = jax.random.uniform(ket, (B, T_mel), jnp.float32, minval=0.0, maxval=5.0)

    outs = variance_adaptor_forward(params, cfg, x, src_pos, mel_pos,
                                    pitch_target, energy_target, duration_target)
    for o in outs:
        jax.block_until_ready(o)

    # sanity on shapes
    assert outs[0].shape == (B, T_mel, H)
    assert outs[1].shape == (B, T_src)
    assert outs[2].shape == (B, T_src)
    assert outs[3].shape == (B, T_mel)
    assert outs[4].shape == (B, T_mel)
    assert outs[5].shape == (B, T_mel)
    print("KERNEL_OK")
</pallas_src>

<mosaic_0001>
module attributes {stable_mosaic.version = 11 : i64} {
  func.func @kernel(%arg0: i32, %arg1: memref<1x8x128xf32, #tpu.memory_space<vmem>>, %arg2: memref<384x128xbf16, #tpu.memory_space<vmem>>, %arg3: memref<1x128xf32, #tpu.memory_space<vmem>>, %arg4: memref<1x128xf32, #tpu.memory_space<vmem>>, %arg5: memref<1x128xf32, #tpu.memory_space<vmem>>, %arg6: memref<384x128xbf16, #tpu.memory_space<vmem>>, %arg7: memref<1x128xf32, #tpu.memory_space<vmem>>, %arg8: memref<1x128xf32, #tpu.memory_space<vmem>>, %arg9: memref<1x128xf32, #tpu.memory_space<vmem>>, %arg10: memref<1x128xf32, #tpu.memory_space<vmem>>, %arg11: memref<1xf32, #tpu.memory_space<smem>>, %arg12: memref<1x1x8xf32, #tpu.memory_space<vmem>>) attributes {dimension_semantics = [#tpu.dimension_semantics<parallel>], iteration_bounds = array<i64: 2>, scalar_prefetch = 0 : i64, scratch_operands = 0 : i64, tpu.core_type = #tpu.core_type<tc>, window_params = [{transform_indices = @transform_0, window_bounds = array<i64: 1, 8, 128>}, {pipeline_mode = #tpu.pipeline_mode<synchronous>, transform_indices = @transform_1, window_bounds = array<i64: 384, 128>}, {pipeline_mode = #tpu.pipeline_mode<synchronous>, transform_indices = @transform_2, window_bounds = array<i64: 1, 128>}, {pipeline_mode = #tpu.pipeline_mode<synchronous>, transform_indices = @transform_3, window_bounds = array<i64: 1, 128>}, {pipeline_mode = #tpu.pipeline_mode<synchronous>, transform_indices = @transform_4, window_bounds = array<i64: 1, 128>}, {pipeline_mode = #tpu.pipeline_mode<synchronous>, transform_indices = @transform_5, window_bounds = array<i64: 384, 128>}, {pipeline_mode = #tpu.pipeline_mode<synchronous>, transform_indices = @transform_6, window_bounds = array<i64: 1, 128>}, {pipeline_mode = #tpu.pipeline_mode<synchronous>, transform_indices = @transform_7, window_bounds = array<i64: 1, 128>}, {pipeline_mode = #tpu.pipeline_mode<synchronous>, transform_indices = @transform_8, window_bounds = array<i64: 1, 128>}, {pipeline_mode = #tpu.pipeline_mode<synchronous>, transform_indices = @transform_9, window_bounds = array<i64: 1, 128>}, {transform_indices = @transform_10, window_bounds = array<i64: 1>}, {transform_indices = @transform_11, window_bounds = array<i64: 1, 1, 8>}]} {
    %c0 = arith.constant 0 : index
    %c0_0 = arith.constant 0 : index
    %c0_1 = arith.constant 0 : index
    %0 = vector.load %arg1[%c0, %c0_0, %c0_1] : memref<1x8x128xf32, #tpu.memory_space<vmem>>, vector<1x8x128xf32>
    %1 = vector.shape_cast %0 : vector<1x8x128xf32> to vector<8x128xf32>
    %cst = arith.constant 0.000000e+00 : f32
    %2 = vector.broadcast %cst : f32 to vector<1x128xf32>
    %3 = vector.extract_strided_slice %1 {offsets = [0, 0], sizes = [7, 128], strides = [1, 1]} : vector<8x128xf32> to vector<7x128xf32>
    %4 = tpu.concatenate %2, %3 in 0 : vector<1x128xf32>, vector<7x128xf32> -> vector<8x128xf32>
    %5 = vector.extract_strided_slice %1 {offsets = [1, 0], sizes = [7, 128], strides = [1, 1]} : vector<8x128xf32> to vector<7x128xf32>
    %6 = tpu.concatenate %5, %2 in 0 : vector<7x128xf32>, vector<1x128xf32> -> vector<8x128xf32>
    %7 = arith.truncf %4 : vector<8x128xf32> to vector<8x128xbf16>
    %8 = arith.truncf %1 : vector<8x128xf32> to vector<8x128xbf16>
    %9 = arith.truncf %6 : vector<8x128xf32> to vector<8x128xbf16>
    %10 = tpu.concatenate %7, %8, %9 in 1 : vector<8x128xbf16>, vector<8x128xbf16>, vector<8x128xbf16> -> vector<8x384xbf16>
    %c0_2 = arith.constant 0 : index
    %c0_3 = arith.constant 0 : index
    %11 = vector.load %arg2[%c0_2, %c0_3] : memref<384x128xbf16, #tpu.memory_space<vmem>>, vector<384x128xbf16>
    %c0_4 = arith.constant 0 : index
    %c0_5 = arith.constant 0 : index
    %12 = vector.load %arg3[%c0_4, %c0_5] : memref<1x128xf32, #tpu.memory_space<vmem>>, vector<1x128xf32>
    %c0_6 = arith.constant 0 : index
    %c0_7 = arith.constant 0 : index
    %13 = vector.load %arg4[%c0_6, %c0_7] : memref<1x128xf32, #tpu.memory_space<vmem>>, vector<1x128xf32>
    %c0_8 = arith.constant 0 : index
    %c0_9 = arith.constant 0 : index
    %14 = vector.load %arg5[%c0_8, %c0_9] : memref<1x128xf32, #tpu.memory_space<vmem>>, vector<1x128xf32>
    %c0_10 = arith.constant 0 : index
    %c0_11 = arith.constant 0 : index
    %15 = vector.load %arg6[%c0_10, %c0_11] : memref<384x128xbf16, #tpu.memory_space<vmem>>, vector<384x128xbf16>
    %c0_12 = arith.constant 0 : index
    %c0_13 = arith.constant 0 : index
    %16 = vector.load %arg7[%c0_12, %c0_13] : memref<1x128xf32, #tpu.memory_space<vmem>>, vector<1x128xf32>
    %c0_14 = arith.constant 0 : index
    %c0_15 = arith.constant 0 : index
    %17 = vector.load %arg8[%c0_14, %c0_15] : memref<1x128xf32, #tpu.memory_space<vmem>>, vector<1x128xf32>
    %c0_16 = arith.constant 0 : index
    %c0_17 = arith.constant 0 : index
    %18 = vector.load %arg9[%c0_16, %c0_17] : memref<1x128xf32, #tpu.memory_space<vmem>>, vector<1x128xf32>
    %c0_18 = arith.constant 0 : index
    %c0_19 = arith.constant 0 : index
    %19 = vector.load %arg10[%c0_18, %c0_19] : memref<1x128xf32, #tpu.memory_space<vmem>>, vector<1x128xf32>
    %c0_20 = arith.constant 0 : index
    %20 = memref.load %arg11[%c0_20] : memref<1xf32, #tpu.memory_space<smem>>
    %21 = tpu.iota {dimensions = array<i32: 0>} : vector<8x1xi32>
    %c8_i32 = arith.constant 8 : i32
    %22 = vector.broadcast %c8_i32 : i32 to vector<8x1xi32>
    %23 = arith.cmpi slt, %21, %22 : vector<8x1xi32>
    %cst_21 = arith.constant dense<0.000000e+00> : vector<8x128xf32>
    %24 = tpu.matmul %10, %11, %cst_21 {dimension_numbers = #tpu.dot_dimension_numbers<[1], [0], [0], [1], [0, 0, 1, 1], [], []>} : vector<8x384xbf16>, vector<384x128xbf16>, vector<8x128xf32> -> vector<8x128xf32>
    %25 = vector.broadcast %12 : vector<1x128xf32> to vector<8x128xf32>
    %26 = arith.addf %24, %25 : vector<8x128xf32>
    %cst_22 = arith.constant dense<0.000000e+00> : vector<8xf32>
    %27 = vector.multi_reduction <add>, %26, %cst_22 [1] : vector<8x128xf32> to vector<8xf32>
    %28 = vector.shape_cast %27 : vector<8xf32> to vector<8x1xf32>
    %cst_23 = arith.constant 3.125000e-02 : f32
    %29 = vector.broadcast %cst_23 : f32 to vector<8x1xf32>
    %30 = arith.mulf %28, %29 : vector<8x1xf32>
    %31 = arith.mulf %26, %26 : vector<8x128xf32>
    %cst_24 = arith.constant dense<0.000000e+00> : vector<8xf32>
    %32 = vector.multi_reduction <add>, %31, %cst_24 [1] : vector<8x128xf32> to vector<8xf32>
    %33 = vector.shape_cast %32 : vector<8xf32> to vector<8x1xf32>
    %cst_25 = arith.constant 3.125000e-02 : f32
    %34 = vector.broadcast %cst_25 : f32 to vector<8x1xf32>
    %35 = arith.mulf %33, %34 : vector<8x1xf32>
    %36 = arith.mulf %30, %30 : vector<8x1xf32>
    %37 = arith.subf %35, %36 : vector<8x1xf32>
    %38 = vector.broadcast %30 : vector<8x1xf32> to vector<8x128xf32>
    %39 = arith.subf %26, %38 : vector<8x128xf32>
    %cst_26 = arith.constant 9.99999974E-6 : f32
    %40 = vector.broadcast %cst_26 : f32 to vector<8x1xf32>
    %41 = arith.addf %37, %40 : vector<8x1xf32>
    %42 = math.rsqrt %41 : vector<8x1xf32>
    %43 = vector.broadcast %42 : vector<8x1xf32> to vector<8x128xf32>
    %44 = arith.mulf %39, %43 : vector<8x128xf32>
    %45 = vector.broadcast %13 : vector<1x128xf32> to vector<8x128xf32>
    %46 = arith.mulf %44, %45 : vector<8x128xf32>
    %47 = vector.broadcast %14 : vector<1x128xf32> to vector<8x128xf32>
    %48 = arith.addf %46, %47 : vector<8x128xf32>
    %cst_27 = arith.constant 0.000000e+00 : f32
    %49 = vector.broadcast %cst_27 : f32 to vector<8x128xf32>
    %50 = arith.maximumf %48, %49 : vector<8x128xf32>
    %cst_28 = arith.constant 0.000000e+00 : f32
    %51 = vector.shape_cast %23 : vector<8x1xi1> to vector<8x1xi1>
    %52 = vector.broadcast %51 : vector<8x1xi1> to vector<8x128xi1>
    %53 = vector.broadcast %cst_28 : f32 to vector<8x128xf32>
    %54 = arith.select %52, %50, %53 : vector<8x128xi1>, vector<8x128xf32>
    %cst_29 = arith.constant 0.000000e+00 : f32
    %55 = vector.broadcast %cst_29 : f32 to vector<1x128xf32>
    %56 = vector.extract_strided_slice %54 {offsets = [0, 0], sizes = [7, 128], strides = [1, 1]} : vector<8x128xf32> to vector<7x128xf32>
    %57 = tpu.concatenate %55, %56 in 0 : vector<1x128xf32>, vector<7x128xf32> -> vector<8x128xf32>
    %58 = vector.extract_strided_slice %54 {offsets = [1, 0], sizes = [7, 128], strides = [1, 1]} : vector<8x128xf32> to vector<7x128xf32>
    %59 = tpu.concatenate %58, %55 in 0 : vector<7x128xf32>, vector<1x128xf32> -> vector<8x128xf32>
    %60 = arith.truncf %57 : vector<8x128xf32> to vector<8x128xbf16>
    %61 = arith.truncf %54 : vector<8x128xf32> to vector<8x128xbf16>
    %62 = arith.truncf %59 : vector<8x128xf32> to vector<8x128xbf16>
    %63 = tpu.concatenate %60, %61, %62 in 1 : vector<8x128xbf16>, vector<8x128xbf16>, vector<8x128xbf16> -> vector<8x384xbf16>
    %cst_30 = arith.constant dense<0.000000e+00> : vector<8x128xf32>
    %64 = tpu.matmul %63, %15, %cst_30 {dimension_numbers = #tpu.dot_dimension_numbers<[1], [0], [0], [1], [0, 0, 1, 1], [], []>} : vector<8x384xbf16>, vector<384x128xbf16>, vector<8x128xf32> -> vector<8x128xf32>
    %65 = vector.broadcast %16 : vector<1x128xf32> to vector<8x128xf32>
    %66 = arith.addf %64, %65 : vector<8x128xf32>
    %cst_31 = arith.constant dense<0.000000e+00> : vector<8xf32>
    %67 = vector.multi_reduction <add>, %66, %cst_31 [1] : vector<8x128xf32> to vector<8xf32>
    %68 = vector.shape_cast %67 : vector<8xf32> to vector<8x1xf32>
    %cst_32 = arith.constant 3.125000e-02 : f32
    %69 = vector.broadcast %cst_32 : f32 to vector<8x1xf32>
    %70 = arith.mulf %68, %69 : vector<8x1xf32>
    %71 = arith.mulf %66, %66 : vector<8x128xf32>
    %cst_33 = arith.constant dense<0.000000e+00> : vector<8xf32>
    %72 = vector.multi_reduction <add>, %71, %cst_33 [1] : vector<8x128xf32> to vector<8xf32>
    %73 = vector.shape_cast %72 : vector<8xf32> to vector<8x1xf32>
    %cst_34 = arith.constant 3.125000e-02 : f32
    %74 = vector.broadcast %cst_34 : f32 to vector<8x1xf32>
    %75 = arith.mulf %73, %74 : vector<8x1xf32>
    %76 = arith.mulf %70, %70 : vector<8x1xf32>
    %77 = arith.subf %75, %76 : vector<8x1xf32>
    %78 = vector.broadcast %70 : vector<8x1xf32> to vector<8x128xf32>
    %79 = arith.subf %66, %78 : vector<8x128xf32>
    %cst_35 = arith.constant 9.99999974E-6 : f32
    %80 = vector.broadcast %cst_35 : f32 to vector<8x1xf32>
    %81 = arith.addf %77, %80 : vector<8x1xf32>
    %82 = math.rsqrt %81 : vector<8x1xf32>
    %83 = vector.broadcast %82 : vector<8x1xf32> to vector<8x128xf32>
    %84 = arith.mulf %79, %83 : vector<8x128xf32>
    %85 = vector.broadcast %17 : vector<1x128xf32> to vector<8x128xf32>
    %86 = arith.mulf %84, %85 : vector<8x128xf32>
    %87 = vector.broadcast %18 : vector<1x128xf32> to vector<8x128xf32>
    %88 = arith.addf %86, %87 : vector<8x128xf32>
    %cst_36 = arith.constant 0.000000e+00 : f32
    %89 = vector.broadcast %cst_36 : f32 to vector<8x128xf32>
    %90 = arith.maximumf %88, %89 : vector<8x128xf32>
    %cst_37 = arith.constant dense<0.000000e+00> : vector<1x8xf32>
    %91 = tpu.matmul %19, %90, %cst_37 {dimension_numbers = #tpu.dot_dimension_numbers<[1], [1], [0], [0], [0, 0, 1, 0], [], []>} : vector<1x128xf32>, vector<8x128xf32>, vector<1x8xf32> -> vector<1x8xf32>
    %92 = vector.broadcast %20 : f32 to vector<1x8xf32>
    %93 = arith.addf %91, %92 : vector<1x8xf32>
    %94 = vector.shape_cast %93 : vector<1x8xf32> to vector<1x1x8xf32>
    %c0_38 = arith.constant 0 : index
    %c0_39 = arith.constant 0 : index
    %c0_40 = arith.constant 0 : index
    %95 = vector.load %arg12[%c0_38, %c0_39, %c0_40] : memref<1x1x8xf32, #tpu.memory_space<vmem>>, vector<1x1x8xf32>
    tpu.vector_store %arg12[%c0_38, %c0_39, %c0_40], %94 {strides = array<i32>} : memref<1x1x8xf32, #tpu.memory_space<vmem>>, vector<1x1x8xf32>,
    return
  }
  func.func @transform_0(%arg0: i32) -> (i32, i32, i32) {
    %c0_i32 = arith.constant 0 : i32
    %c0_i32_0 = arith.constant 0 : i32
    %c0_i32_1 = arith.constant 0 : i32
    return %arg0, %c0_i32, %c0_i32_0 : i32, i32, i32
  }
  func.func @transform_1(%arg0: i32) -> (i32, i32) {
    %c0_i32 = arith.constant 0 : i32
    %c0_i32_0 = arith.constant 0 : i32
    %c0_i32_1 = arith.constant 0 : i32
    return %c0_i32, %c0_i32_0 : i32, i32
  }
  func.func @transform_2(%arg0: i32) -> (i32, i32) {
    %c0_i32 = arith.constant 0 : i32
    %c0_i32_0 = arith.constant 0 : i32
    %c0_i32_1 = arith.constant 0 : i32
    return %c0_i32, %c0_i32_0 : i32, i32
  }
  func.func @transform_3(%arg0: i32) -> (i32, i32) {
    %c0_i32 = arith.constant 0 : i32
    %c0_i32_0 = arith.constant 0 : i32
    %c0_i32_1 = arith.constant 0 : i32
    return %c0_i32, %c0_i32_0 : i32, i32
  }
  func.func @transform_4(%arg0: i32) -> (i32, i32) {
    %c0_i32 = arith.constant 0 : i32
    %c0_i32_0 = arith.constant 0 : i32
    %c0_i32_1 = arith.constant 0 : i32
    return %c0_i32, %c0_i32_0 : i32, i32
  }
  func.func @transform_5(%arg0: i32) -> (i32, i32) {
    %c0_i32 = arith.constant 0 : i32
    %c0_i32_0 = arith.constant 0 : i32
    %c0_i32_1 = arith.constant 0 : i32
    return %c0_i32, %c0_i32_0 : i32, i32
  }
  func.func @transform_6(%arg0: i32) -> (i32, i32) {
    %c0_i32 = arith.constant 0 : i32
    %c0_i32_0 = arith.constant 0 : i32
    %c0_i32_1 = arith.constant 0 : i32
    return %c0_i32, %c0_i32_0 : i32, i32
  }
  func.func @transform_7(%arg0: i32) -> (i32, i32) {
    %c0_i32 = arith.constant 0 : i32
    %c0_i32_0 = arith.constant 0 : i32
    %c0_i32_1 = arith.constant 0 : i32
    return %c0_i32, %c0_i32_0 : i32, i32
  }
  func.func @transform_8(%arg0: i32) -> (i32, i32) {
    %c0_i32 = arith.constant 0 : i32
    %c0_i32_0 = arith.constant 0 : i32
    %c0_i32_1 = arith.constant 0 : i32
    return %c0_i32, %c0_i32_0 : i32, i32
  }
  func.func @transform_9(%arg0: i32) -> (i32, i32) {
    %c0_i32 = arith.constant 0 : i32
    %c0_i32_0 = arith.constant 0 : i32
    %c0_i32_1 = arith.constant 0 : i32
    return %c0_i32, %c0_i32_0 : i32, i32
  }
  func.func @transform_10(%arg0: i32) -> i32 {
    %c0_i32 = arith.constant 0 : i32
    %c0_i32_0 = arith.constant 0 : i32
    return %c0_i32 : i32
  }
  func.func @transform_11(%arg0: i32) -> (i32, i32, i32) {
    %c0_i32 = arith.constant 0 : i32
    %c0_i32_0 = arith.constant 0 : i32
    %c0_i32_1 = arith.constant 0 : i32
    return %arg0, %c0_i32, %c0_i32_0 : i32, i32, i32
  }
}

</mosaic_0001>

<bundles_post_ra>
// kernel: tpu_custom_call.1
= control target key start
LH: loop header
LB: loop body
LE: loop exit
PB: predicated region body
PF: predicated region fallthrough
CT: control target
= control target key end

     0   :  { %s1903_s0 = inlined_call_operand.hbm [shape: f32[2,8,128], index: 0, kind: input, shape index: {}]   ;;  %s1904_s1 = inlined_call_operand.hbm [shape: bf16[384,128], index: 1, kind: input, shape index: {}]   ;;  %s1905_s2 = inlined_call_operand.vmem [shape: f32[1,128], index: 2, kind: input, shape index: {}]   ;;  %s1906_s3 = inlined_call_operand.vmem [shape: f32[1,128], index: 3, kind: input, shape index: {}]   ;;  %s1907_s4 = inlined_call_operand.vmem [shape: f32[1,128], index: 4, kind: input, shape index: {}]   ;;  %s1908_s5 = inlined_call_operand.hbm [shape: bf16[384,128], index: 5, kind: input, shape index: {}]   ;;  %s1909_s6 = inlined_call_operand.vmem [shape: f32[1,128], index: 6, kind: input, shape index: {}]   ;;  %s1910_s7 = inlined_call_operand.vmem [shape: f32[1,128], index: 7, kind: input, shape index: {}]   ;;  %s1911_s8 = inlined_call_operand.vmem [shape: f32[1,128], index: 8, kind: input, shape index: {}]   ;;  %s1912_s9 = inlined_call_operand.vmem [shape: f32[1,128], index: 9, kind: input, shape index: {}]   ;;  %s1913_s10 = inlined_call_operand.<no memory space> [shape: f32[1], index: 10, kind: input, shape index: {}]   ;;  %s1914_s11 = inlined_call_operand.hbm [shape: f32[2,1,8], index: 11, kind: output, shape index: {}]  }
   0x1   :  { %1918 = sst [smem:[#allocation16_spill]] %s1904_s1 }
   0x2   :  { %1919 = sst [smem:[#allocation17_spill]] %s1908_s5 }
   0x3   :  { %16 = sst [smem:[#allocation2]] %s1913_s10 }
   0x4   :  { %17 = vsyncpa [#allocation4], 0 }
   0x5   :  { %19 = vsyncpa [#allocation4 + $0x1], 0 }
   0x6   :  { %20 = vsyncpa [#allocation7], 0 }
   0x7   :  { %21 = vsyncpa [#allocation5], 0 }
   0x8   :  { %23 = vsyncpa [#allocation5 + $0x1], 0  ;;  %s1702_s19 = smov 0   ;;  %s1704_s20 = smov 0  }
   0x9   :  { %s1706_s21 = smov 0   ;;  %s1708_s22 = smov 0  }
   0xa LB: > { %1920 = sst [smem:[#allocation13_spill]] %s1629_s21  ;;  %s1726_s25 = sadd.s32 4294967295, %s1633_s22   ;;  %s1633_s22 = sphi %s1708_s22, %s1936_s22   ;;  %s1629_s21 = sphi %s1706_s21, %s1938_s21   ;;  %s1625_s20 = sphi %s1704_s20, %s1940_s20   ;;  %s1621_s19 = sphi %s1702_s19, %s1939_s19  }
   0xb   : > { %s1921_s1 = sld [smem:[#allocation16_spill]]  ;;  %p1126_p0 = scmp.ge.s32.totalorder %s1633_s22, 1 }
   0xc   : > { %p50_p1 = scmp.eq.s32.totalorder %s1726_s25, 0  ;;  %p296_p2 = scmp.lt.s32.totalorder %s1633_s22, 3 }
   0xd   : > { %s1635_s27 = smov [#allocation6]   ;;  %s1923_s5 = sld [smem:[#allocation17_spill]] }
   0xe   : > { %p1731_p3 = pnand %p1126_p0, %p296_p2  ;;  %s309_s28 = sshll.u32 %s1635_s27, 4  ;;  %s310_s28 = int_to_ptr.vmem [resolvable:$true] %s309_s28 }
   0xf   : > { %s1636_s13 = smov [#allocation8]   ;;  %s1637_s15 = smov 64  }
  0x10   : > { %p1406_p4 = pneg %p1731_p3  ;;  %s332_s14 = sshll.u32 %s1636_s13, 4  ;;  %s333_s14 = int_to_ptr.vmem [resolvable:$true] %s332_s14 }
  0x11   : > { %s307_s24 = sshll.u32 %s1921_s1, 4  ;;  %s1638_s16 = smov 4   ;;  %s308_s24 = int_to_ptr.hbm [resolvable:$true] %s307_s24 }
  0x12   : > { %p1407_p6 = pnand %p1406_p4, %p50_p1  ;;  %s1125_s17 = sadd.s32 4294967294, %s1633_s22  }
  0x13   : > { %s330_s12 = sshll.u32 %s1923_s5, 4  ;;  %s1745_s18 = sadd.s32 1, %s1633_s22   ;;  %s331_s12 = int_to_ptr.hbm [resolvable:$true] %s330_s12 }
  0x14   : > { %1409 = dma.hbm_to_vmem [thread:$0]  (!%p1407_p6), %s308_s24, 3072, %s310_s28, [#allocation7], %s1637_s15, %s1637_s15, %s1638_s16  }
  0x15   : > { %1412 = dma.hbm_to_vmem [thread:$0]  (!%p1407_p6), %s331_s12, 3072, %s333_s14, [#allocation7], %s1637_s15, %s1637_s15, %s1638_s16  }
  0x16   : > { %1924 = sst [smem:[#allocation14_spill]] %s1745_s18  ;;  %s33_s10 = ssub.s32 %s1633_s22, %s1745_s18 }
  0x17   : > { %s36_s23 = sadd.s32 1, %s1629_s21  ;;  %p34_p7 = scmp.eq.s32.totalorder %s33_s10, 0 }
  0x18   : > { %p43_p8 = scmp.ne.s32.totalorder %s1629_s21, %s1625_s20  ;;  %p44_p9 = scmp.eq.s32.totalorder %s1633_s22, 0 }
  0x19   : > { %p49_p10 = scmp.ne.s32.totalorder %s1625_s20, %s1621_s19  ;;  %p283_p13 = scmp.eq.s32.totalorder %s1726_s25, 1 }
  0x1a   : > { %s1756_s27 = scalar_select %p34_p7, %s1629_s21, %s36_s23  }
  0x1b   : > { %p1758_p11 = por %p44_p9, %p43_p8  ;;  %p1764_p12 = por %p50_p1, %p49_p10 }
  0x1c   : > { %1925 = sst [smem:[#allocation15_spill]] %s1756_s27  ;;  %p289_p0 = scmp.eq.s32.totalorder %s1125_s17, 1 }
  0x1d   : > { %p1423_p2 = scmp.lt.s32.totalorder %s1633_s22, 2  ;;  %s361_s28 = sand.u32 1, %s1629_s21  }
  0x1e   : > { %p1771_p4 = por %p283_p13, %p43_p8  ;;  %p1775_p6 = por %p289_p0, %p49_p10 }
  0x1f   : > { %s1130_s13 = sshll.u32 %s361_s28, 3  ;;  %s1131_s14 = sshll.u32 %s1633_s22, 3 }
  0x20   : > { %s369_s10 = scalar_lea.hbm %s1903_s0, %s1131_s14  ;;  %s365_s23 = scalar_lea.vmem [#allocation3], %s1130_s13 }
  0x21   : > { %s373_s1 = sshll.u32 %s365_s23, 4  ;;  %s371_s5 = sshll.u32 %s369_s10, 4  ;;  %s374_s1 = int_to_ptr.vmem [resolvable:$true] %s373_s1  ;;  %s372_s5 = int_to_ptr.hbm [resolvable:$true] %s371_s5 }
  0x22   : > { %p1785_p7 = pnand %p1423_p2, %p1758_p11  ;;  %s362_s27 = scalar_lea.sflag [#allocation4], %s361_s28 }
  0x23   : > { %s1533_s21 = sshra.s32 %s372_s5, 4  ;;  %s1540_s15 = scalar_lea.hbm %s1903_s0, 16  ;;  %s1534_s21 = int_to_ptr.hbm [resolvable:$true] %s1533_s21 }
  0x24   : > { %s1535_s18 = scalar_lea.hbm %s1534_s21, 8  ;;  %p1537_p9 = pneg %p1785_p7 }
  0x25   : > { %p1536_p8 = scmp.ne.s32.totalorder %s1534_s21, %s1535_s18  ;;  %p1541_p11 = scmp.lt.s32.totalorder %s1534_s21, %s1903_s0 }
  0x26   : > { %p1542_p0 = scmp.lt.s32.totalorder %s1540_s15, %s1535_s18 }
  0x27   : > { %p1538_p10 = pnand %p1537_p9, %p1536_p8 }
  0x28   : > { %p1543_p2 = por %p1542_p0, %p1541_p11 }
  0x29   : > { %p1539_p13 = pneg %p1538_p10 }
  0x2b   : > { %p1544_p5 = pnand %p1543_p2, %p1539_p13 }
  0x2d   : > { %1547 = shalt.err (!%p1544_p5)
}
  0x2e   : > { %1416 = dma.hbm_to_vmem [thread:$0]  (!%p1785_p7), %s372_s5, 128, %s374_s1, %s362_s27  }
  0x2f   : > { %382 = sbr.rel (%p1731_p3) target bundleno = 817 (0x331), region = 64  ;;  %s1802_s28 = sand.u32 (!%p1731_p3), 1, %s1625_s20  }
  0x30   : > { %s1133_s10 = sshll.u32 (!%p1731_p3), %s1802_s28, 3  ;;  %s385_s23 = scalar_lea.sflag (!%p1731_p3), [#allocation4], %s1802_s28 }
  0x31   : > { %s1806_s13 = scalar_lea.vmem (!%p1731_p3), [#allocation3], %s1133_s10 }
  0x34   : > { %1608 = dma.done.wait (%p1764_p12), %s385_s23, 128  }
  0x35   : > { %1610 = vsyncadd (%p1764_p12), %s385_s23, 4294967168 }
  0x36   : > { %1612 = dma.done.wait (%p50_p1), [#allocation7], 6144  }
  0x37   : > { %1614 = vsyncadd (%p50_p1), [#allocation7], 4294961152  ;;  %v1353_v0 = vld [vmem:[#allocation6 + $0x38] sm:$0xff]  ;;  %v1352_v3 = vld [vmem:[#allocation6 + $0x30] sm:$0xff]  ;;  %vm441_vm0 = vcmask 1040384   ;;  %vm445_vm2 = vcmask 1046528   ;;  %s1036_s21 = scalar_lea.hbm %s1914_s11, %s1726_s25 }
  0x38   : > { %v1361_v1 = vld [vmem:[#allocation6 + $0x78] sm:$0xff]  ;;  %704 = vmatpush.bf16.msra.mxu0 %v1353_v0  ;;  %v1360_v4 = vld [vmem:[#allocation6 + $0x70] sm:$0xff]  ;;  %v1351_v6 = vld [vmem:[#allocation6 + $0x28] sm:$0xff]  ;;  %s436_s26 = scalar_lea.vmem [#allocation9], %s1802_s28  ;;  %s1040_s27 = sshll.u32 %s1036_s21, 4  ;;  %vm1025_vm11 = vcmask 57344   ;;  %s1041_s27 = int_to_ptr.hbm [resolvable:$true] %s1040_s27 }
  0x39   : > { %v1369_v2 = vld [vmem:[#allocation6 + $0xb8] sm:$0xff]  ;;  %717 = vmatpush.bf16.msra.mxu1 %v1361_v1  ;;  %v1368_v5 = vld [vmem:[#allocation6 + $0xb0] sm:$0xff]  ;;  %v1359_v7 = vld [vmem:[#allocation6 + $0x68] sm:$0xff]  ;;  %s1038_s18 = sshll.u32 %s436_s26, 4  ;;  %s1028_s24 = scalar_lea.sflag [#allocation5], %s1802_s28  ;;  %s1039_s18 = int_to_ptr.vmem [resolvable:$true] %s1038_s18 }
  0x3a   : > { %730 = vmatpush.bf16.msra.mxu2 %v1369_v2  ;;  %v1367_v8 = vld [vmem:[#allocation6 + $0xa8] sm:$0xff]  ;;  %v1350_v9 = vld [vmem:[#allocation6 + $0x20] sm:$0xff]  ;;  %v1349_v12 = vld [vmem:[#allocation6 + $0x18] sm:$0xff]  ;;  %s1577_s17 = sshra.s32 %s1041_s27, 4  ;;  %s1583_s16 = scalar_lea.hbm %s1914_s11, 2  ;;  %s1578_s17 = int_to_ptr.hbm [resolvable:$true] %s1577_s17 }
  0x3b   : > { %v1358_v10 = vld [vmem:[#allocation6 + $0x60] sm:$0xff]  ;;  %v1357_v13 = vld [vmem:[#allocation6 + $0x58] sm:$0xff]  ;;  %v1348_v15 = vld [vmem:[#allocation6 + $0x10] sm:$0xff]  ;;  %s1579_s14 = scalar_lea.hbm %s1578_s17, 1  ;;  %p1584_p12 = scmp.lt.s32.totalorder %s1578_s17, %s1914_s11 }
  0x3c   : > { %705 = vmatpush.bf16.msra.mxu0 %v1352_v3  ;;  %v1366_v11 = vld [vmem:[#allocation6 + $0xa0] sm:$0xff]  ;;  %v1365_v14 = vld [vmem:[#allocation6 + $0x98] sm:$0xff]  ;;  %v1356_v16 = vld [vmem:[#allocation6 + $0x50] sm:$0xff]  ;;  %p1580_p1 = scmp.ne.s32.totalorder %s1578_s17, %s1579_s14  ;;  %p1585_p7 = scmp.lt.s32.totalorder %s1583_s16, %s1579_s14 }
  0x3d   : > { %718 = vmatpush.bf16.msra.mxu1 %v1360_v4  ;;  %v1364_v17 = vld [vmem:[#allocation6 + $0x90] sm:$0xff]  ;;  %v1347_v18 = vld [vmem:[#allocation6 + $0x8] sm:$0xff]  ;;  %v1346_v23 = vld [vmem:[#allocation6] sm:$0xff] }
  0x3e   : > { %731 = vmatpush.bf16.msra.mxu2 %v1368_v5  ;;  %v1355_v19 = vld [vmem:[#allocation6 + $0x48] sm:$0xff]  ;;  %v437_v20 = vld [vmem:[%s1806_s13] sm:$0xff]  ;;  %v1354_v24 = vld [vmem:[#allocation6 + $0x40] sm:$0xff]  ;;  %s553_s13 = sld [smem:[#allocation2]]  ;;  %p1581_p3 = pnand %p1580_p1, %p1771_p4 }
  0x3f   : > { %v1363_v21 = vld [vmem:[#allocation6 + $0x88] sm:$0xff]  ;;  %v439_v22 = vrot.slane %v437_v20, 7  ;;  %v443_v25 = vrot.slane %v437_v20, 1  ;;  %v1362_v26 = vld [vmem:[#allocation6 + $0x80] sm:$0xff]  ;;  %vm1817_vm1 = vmneg %vm441_vm0  ;;  %v448_v29 = vpack.c.bf16 %v437_v20, %v437_v20  ;;  %p1586_p8 = por %p1585_p7, %p1584_p12 }
  0x40   : > { %706 = vmatpush.bf16.msra.mxu0 %v1351_v6  ;;  %vm1234_vm3 = vmpackc.low %vm1817_vm1, %vm1817_vm1  ;;  %v1463_v32 = vld [vmem:[%s1905_s2] ss:$0 sm:$0xff]  ;;  %v1385_v43 = vld [vmem:[#allocation8 + $0x78] sm:$0xff]  ;;  %p1582_p5 = pneg %p1581_p3 }
  0x41   : > { %719 = vmatpush.bf16.msra.mxu1 %v1359_v7  ;;  %v1235_v28 = vpack.c.bf16 %v439_v22, %v439_v22  ;;  %v1238_v30 = vpack.c.bf16 %v443_v25, %v443_v25  ;;  %vm1824_vm4 = vmpackc.low %vm445_vm2, %vm445_vm2  ;;  %v1377_v44 = vld [vmem:[#allocation8 + $0x38] sm:$0xff]  ;;  %v1384_v46 = vld [vmem:[#allocation8 + $0x70] sm:$0xff] }
  0x42   : > { %732 = vmatpush.bf16.msra.mxu2 %v1367_v8  ;;  %v1393_v45 = vld [vmem:[#allocation8 + $0xb8] sm:$0xff]  ;;  %934 = vmatpush.bf16.msra.mxu3 %v1377_v44  ;;  %v1376_v47 = vld [vmem:[#allocation8 + $0x30] sm:$0xff]  ;;  %v1383_v49 = vld [vmem:[#allocation8 + $0x68] sm:$0xff]  ;;  %p1587_p9 = pnand %p1586_p8, %p1582_p5 }
  0x43   : > { %v1392_v48 = vld [vmem:[#allocation8 + $0xb0] sm:$0xff]  ;;  %v1375_v50 = vld [vmem:[#allocation8 + $0x28] sm:$0xff]  ;;  %v1382_v52 = vld [vmem:[#allocation8 + $0x60] sm:$0xff] }
  0x44   : > { %707 = vmatpush.bf16.msra.mxu0 %v1350_v9  ;;  %v1391_v51 = vld [vmem:[#allocation8 + $0xa8] sm:$0xff]  ;;  %v1374_v53 = vld [vmem:[#allocation8 + $0x20] sm:$0xff]  ;;  %v1381_v55 = vld [vmem:[#allocation8 + $0x58] sm:$0xff] }
  0x45   : > { %720 = vmatpush.bf16.msra.mxu1 %v1358_v10  ;;  %v1390_v54 = vld [vmem:[#allocation8 + $0xa0] sm:$0xff]  ;;  %v1373_v56 = vld [vmem:[#allocation8 + $0x18] sm:$0xff]  ;;  %v1380_v58 = vld [vmem:[#allocation8 + $0x50] sm:$0xff] }
  0x46   : > { %733 = vmatpush.bf16.msra.mxu2 %v1366_v11  ;;  %935 = vmatpush.bf16.msra.mxu3 %v1376_v47  ;;  %v1389_v57 = vld [vmem:[#allocation8 + $0x98] sm:$0xff]  ;;  %v1372_v60 = vld [vmem:[#allocation8 + $0x10] sm:$0xff]  ;;  %v1379_v62 = vld [vmem:[#allocation8 + $0x48] sm:$0xff] }
  0x47   : > { %v1388_v61 = vld [vmem:[#allocation8 + $0x90] sm:$0xff]  ;;  %v1371_v63 = vld [vmem:[#allocation8 + $0x8] sm:$0xff]  ;;  %v1378_v1 = vld [vmem:[#allocation8 + $0x40] sm:$0xff] }
  0x48   : > { %708 = vmatpush.bf16.msra.mxu0 %v1349_v12  ;;  %v1387_v0 = vld [vmem:[#allocation8 + $0x88] sm:$0xff]  ;;  %v1370_v3 = vld [vmem:[#allocation8] sm:$0xff]  ;;  %v1465_v20 = vld [vmem:[%s1907_s4] ss:$0 sm:$0xff] }
  0x49   : > { %721 = vmatpush.bf16.msra.mxu1 %v1357_v13  ;;  %v1386_v4 = vld [vmem:[#allocation8 + $0x80] sm:$0xff] }
  0x4a   : > { %734 = vmatpush.bf16.msra.mxu2 %v1365_v14  ;;  %936 = vmatpush.bf16.msra.mxu3 %v1375_v50 }
  0x4c   : > { %709 = vmatpush.bf16.msra.mxu0 %v1348_v15 }
  0x4d   : > { %722 = vmatpush.bf16.msra.mxu1 %v1356_v16 }
  0x4e   : > { %735 = vmatpush.bf16.msra.mxu2 %v1364_v17  ;;  %937 = vmatpush.bf16.msra.mxu3 %v1374_v53  ;;  %v1464_v17 = vld [vmem:[%s1906_s3] ss:$0 sm:$0xff] }
  0x50   : > { %710 = vmatpush.bf16.msra.mxu0 %v1347_v18 }
  0x51   : > { %723 = vmatpush.bf16.msra.mxu1 %v1355_v19 }
  0x52   : > { %736 = vmatpush.bf16.msra.mxu2 %v1363_v21  ;;  %938 = vmatpush.bf16.msra.mxu3 %v1373_v56 }
  0x54   : > { %711 = vmatpush.bf16.msra.mxu0 %v1346_v23 }
  0x55   : > { %724 = vmatpush.bf16.msra.mxu1 %v1354_v24 }
  0x56   : > { %737 = vmatpush.bf16.msra.mxu2 %v1362_v26  ;;  %939 = vmatpush.bf16.msra.mxu3 %v1372_v60 }
  0x57   : > { %1236 = vmatmul.msk.bf16.vlgmr.msra.gmra.mxu0 %vm1234_vm3, %v1235_v28 }
  0x58   : > { %725 = vmatmul.bf16.vlgmr.msra.gmra.mxu1 %v448_v29  ;;  %947 = vmatpush.bf16.msrb.mxu0 %v1385_v43 }
  0x59   : > { %1239 = vmatmul.msk.bf16.vlgmr.msra.gmra.mxu2 %vm1824_vm4, %v1238_v30  ;;  %960 = vmatpush.bf16.msrb.mxu1 %v1393_v45 }
  0x5a   : > { %940 = vmatpush.bf16.msra.mxu3 %v1371_v63 }
  0x5c   : > { %948 = vmatpush.bf16.msrb.mxu0 %v1384_v46 }
  0x5d   : > { %961 = vmatpush.bf16.msrb.mxu1 %v1392_v48 }
  0x5e   : > { %941 = vmatpush.bf16.msra.mxu3 %v1370_v3 }
  0x60   : > { %949 = vmatpush.bf16.msrb.mxu0 %v1383_v49 }
  0x61   : > { %962 = vmatpush.bf16.msrb.mxu1 %v1391_v51 }
  0x64   : > { %950 = vmatpush.bf16.msrb.mxu0 %v1382_v52 }
  0x65   : > { %963 = vmatpush.bf16.msrb.mxu1 %v1390_v54  ;;  %v1467_v54 = vld [vmem:[%s1910_s7] ss:$0 sm:$0xff] }
  0x68   : > { %951 = vmatpush.bf16.msrb.mxu0 %v1381_v55 }
  0x69   : > { %964 = vmatpush.bf16.msrb.mxu1 %v1389_v57  ;;  %v1468_v57 = vld [vmem:[%s1911_s8] ss:$0 sm:$0xff] }
  0x6c   : > { %952 = vmatpush.bf16.msrb.mxu0 %v1380_v58 }
  0x6d   : > { %965 = vmatpush.bf16.msrb.mxu1 %v1388_v61  ;;  %v552_v61 = vld [vmem:[%s1912_s9] sm:$0x1] }
  0x70   : > { %953 = vmatpush.bf16.msrb.mxu0 %v1379_v62  ;;  %v1004_v62 = vstv %s553_s13 }
  0x71   : > { %966 = vmatpush.bf16.msrb.mxu1 %v1387_v0 }
  0x74   : > { %954 = vmatpush.bf16.msrb.mxu0 %v1378_v1 }
  0x75   : > { %967 = vmatpush.bf16.msrb.mxu1 %v1386_v4 }
  0xd4   : > { %v713_v33 = vpop.f32.mrf.mxu0 }
  0xd5   : > { %v726_v34 = vpop.f32.mrf.mxu1  ;;  %v714_v35 = vadd.f32 %v1463_v32, %v713_v33  ;;  %v1466_v33 = vld [vmem:[%s1909_s6] ss:$0 sm:$0xff] }
  0xd7   : > { %v727_v36 = vadd.f32 %v726_v34, %v714_v35 }
  0xdc   : > { %v739_v37 = vpop.f32.mrf.mxu2  ;;  %v715_v39 = vpop.f32.mrf.mxu0 }
  0xdd   : > { %v1838_v38 = vadd.f32 %v739_v37, %v727_v36  ;;  %v728_v40 = vpop.f32.mrf.mxu1 }
  0xdf   : > { %743 = vadd.xlane.f32.xlu0 %v1838_v38  ;;  %v746_v42 = vmul.f32 %v1838_v38, %v1838_v38 }
  0xe4   : > { %v741_v41 = vpop.f32.mrf.mxu2 }
  0xe7   : > { %747 = vadd.xlane.f32.xlu0 %v746_v42 }
 0x152   : > { %v744_v59 = vpop.xlane.xlu0 %743 }
 0x153   : > { %v745_v2 = vmul.f32 0.03125, %v744_v59 }
 0x155   : > { %v750_v6 = vmul.f32 %v745_v2, %v745_v2  ;;  %v752_v16 = vsub.f32 %v1838_v38, %v745_v2 }
 0x15a   : > { %v748_v5 = vpop.xlane.xlu0 %747 }
 0x15b   : > { %v749_v7 = vmul.f32 0.03125, %v748_v5 }
 0x15d   : > { %v751_v8 = vsub.f32 %v749_v7, %v750_v6 }
 0x15f   : > { %v753_v9 = vadd.f32 1e-05, %v751_v8 }
 0x161   : > { %1469 = vrsqrt.f32 %v753_v9  ;;  %vm760_vm6 = vweird.f32 %v753_v9 }
 0x167   : > { %v1470_v10 = vpop.eup %1469 }
 0x168   : > { %v755_v11 = vmul.f32 %v1470_v10, %v753_v9  ;;  %vm761_vm5 = vweird.f32 %v1470_v10 }
 0x169   : > { %vm762_vm7 = vmor %vm760_vm6, %vm761_vm5 }
 0x16a   : > { %v756_v12 = vmul.f32 %v1470_v10, %v755_v11 }
 0x16c   : > { %v757_v13 = vmul.f32 0.5, %v756_v12 }
 0x16e   : > { %v758_v14 = vsub.f32 1.5, %v757_v13 }
 0x170   : > { %v759_v15 = vmul.f32 %v1470_v10, %v758_v14 }
 0x172   : > { %v763_v18 = vsel %vm762_vm7, %v1470_v10, %v759_v15 }
 0x173   : > { %v764_v19 = vmul.f32 %v763_v18, %v752_v16 }
 0x175   : > { %v768_v21 = vmul.f32 %v1464_v17, %v764_v19 }
 0x177   : > { %v772_v22 = vadd.f32 %v1465_v20, %v768_v21 }
 0x179   : > { %v773_v23 = vmax.f32 %v772_v22, 0.0 }
 0x17b   : > { %v785_v24 = vpack.c.bf16 %v773_v23, %v773_v23  ;;  %v778_v25 = vrot.slane %v773_v23, 7  ;;  %v781_v26 = vrot.slane %v773_v23, 1 }
 0x17d   : > { %955 = vmatmul.bf16.vlgmr.msrb.gmra.mxu0 %v785_v24  ;;  %v1339_v28 = vpack.c.bf16 %v778_v25, %v778_v25  ;;  %v1342_v29 = vpack.c.bf16 %v781_v26, %v781_v26 }
 0x17f   : > { %1340 = vmatmul.msk.bf16.vlgmr.msra.gmra.mxu3 %vm1234_vm3, %v1339_v28  ;;  %1343 = vmatmul.msk.bf16.vlgmr.msrb.gmra.mxu1 %vm1824_vm4, %v1342_v29 }
 0x1fa   : > { %v956_v30 = vpop.f32.mrf.mxu0 }
 0x1fc   : > { %v969_v32 = vpop.f32.mrf.mxu1 }
 0x202   : > { %v943_v34 = vpop.f32.mrf.mxu3  ;;  %v958_v35 = vpop.f32.mrf.mxu0 }
 0x203   : > { %v944_v36 = vadd.f32 %v1466_v33, %v943_v34 }
 0x204   : > { %v971_v37 = vpop.f32.mrf.mxu1 }
 0x205   : > { %v957_v38 = vadd.f32 %v956_v30, %v944_v36 }
 0x207   : > { %v970_v39 = vadd.f32 %v969_v32, %v957_v38 }
 0x209   : > { %973 = vadd.xlane.f32.xlu1 %v970_v39  ;;  %v976_v27 = vmul.f32 %v970_v39, %v970_v39 }
 0x20a   : > { %v945_v40 = vpop.f32.mrf.mxu3 }
 0x211   : > { %977 = vadd.xlane.f32.xlu1 %v976_v27 }
 0x27c   : > { %v974_v41 = vpop.xlane.xlu1 %973 }
 0x27d   : > { %v975_v42 = vmul.f32 0.03125, %v974_v41 }
 0x27f   : > { %v980_v43 = vmul.f32 %v975_v42, %v975_v42  ;;  %v982_v53 = vsub.f32 %v970_v39, %v975_v42 }
 0x284   : > { %v978_v31 = vpop.xlane.xlu1 %977 }
 0x285   : > { %v979_v44 = vmul.f32 0.03125, %v978_v31 }
 0x287   : > { %v981_v45 = vsub.f32 %v979_v44, %v980_v43 }
 0x289   : > { %v983_v46 = vadd.f32 1e-05, %v981_v45 }
 0x28b   : > { %1471 = vrsqrt.f32 %v983_v46  ;;  %vm990_vm9 = vweird.f32 %v983_v46 }
 0x291   : > { %v1472_v47 = vpop.eup %1471 }
 0x292   : > { %v985_v48 = vmul.f32 %v1472_v47, %v983_v46  ;;  %vm991_vm8 = vweird.f32 %v1472_v47 }
 0x293   : > { %vm992_vm10 = vmor %vm990_vm9, %vm991_vm8 }
 0x294   : > { %v986_v49 = vmul.f32 %v1472_v47, %v985_v48 }
 0x296   : > { %v987_v50 = vmul.f32 0.5, %v986_v49 }
 0x298   : > { %v988_v51 = vsub.f32 1.5, %v987_v50 }
 0x29a   : > { %v989_v52 = vmul.f32 %v1472_v47, %v988_v51 }
 0x29c   : > { %v993_v55 = vsel %vm992_vm10, %v1472_v47, %v989_v52 }
 0x29d   : > { %v994_v56 = vmul.f32 %v993_v55, %v982_v53 }
 0x29f   : > { %v998_v58 = vmul.f32 %v1467_v54, %v994_v56 }
 0x2a1   : > { %v1002_v59 = vadd.f32 %v1468_v57, %v998_v58 }
 0x2a3   : > { %v1003_v60 = vmax.f32 %v1002_v59, 0.0 }
 0x2a5   : > { %1020 = vmatpush.xpose.msrb.mxu2 %v1003_v60 }
 0x2a8   : > { %1021 = vmatmul.f32.vlgmr.msrb.gmra.mxu2 %v552_v61 }
 0x32b   : > { %v1022_v63 = vpop.f32.mrf.mxu2 }
 0x32c   : > { %v1023_v0 = vadd.f32 %v1022_v63, %v1004_v62 }
 0x32e   : > { %1026 = vst.msk [vmem:[%s436_s26] sm:$0x1] %vm1025_vm11, %v1023_v0 }
 0x32f   : > { %1590 = shalt.err (!%p1587_p9)
}
 0x330   : > { %1404 = dma.vmem_to_hbm [thread:$0]  (%p1771_p4), %s1039_s18, 16, %s1041_s27, %s1028_s24  }
 0x331 PF: > { %s1052_s28 = sand.u32 1, %s1621_s19   ;;  %p1935_p10 = scmp.ge.s32.totalorder %s1633_s22, 2 }
 0x332   : > { %s1053_s23 = scalar_lea.sflag [#allocation5], %s1052_s28 }
 0x333   : > { %p1418_p13 = pnand %p1935_p10, %p1775_p6 }
 0x335   : > { %p1419_p11 = pneg %p1418_p13 }
 0x337   : > { %1616 = dma.done.wait (%p1419_p11), %s1053_s23, 16  }
 0x338   : > { %1618 = vsyncadd (%p1419_p11), %s1053_s23, 4294967280  ;;  %s1936_s22 = sld [smem:[#allocation14_spill]]  ;;  %s1939_s19 = smov %s1625_s20 }
 0x339   : > { %s1937_s13 = sld [smem:[#allocation13_spill]] }
 0x33a   : > { %s1938_s21 = sld [smem:[#allocation15_spill]] }
 0x33e   : > { %p26_p0 = scmp.ge.s32.totalorder %s1936_s22, 4  }
 0x33f   : > { %s1940_s20 = smov %s1937_s13 }
 0x340   :  { %28 = sbr.rel (!%p26_p0) target bundleno = 10 (0xa), region = 117 }
 0x345   :  { %1058 = vsyncpa [#allocation4], 1 }
 0x346   :  { %1060 = vsyncpa [#allocation4 + $0x1], 1 }
 0x347   :  { %1061 = vsyncpa [#allocation7], 1 }
 0x348   :  { %1062 = vsyncpa [#allocation5], 1 }
 0x349   :  { %1064 = vsyncpa [#allocation5 + $0x1], 1 }

</bundles_post_ra>
